<compile_context>
chip_gen: v7x
topology: tpu7x:2x2x1
jax: 0.10.0
libtpu: 0.0.40
codegen_flags: <defaults>
</compile_context>

<pallas_src>
import functools
import math

import jax
import jax.numpy as jnp
from jax.experimental import pallas as pl
from jax.experimental.pallas import tpu as pltpu

_VMEM_LIMIT = 32 * 1024 * 1024   # explicit scoped-VMEM budget (safe on v5e..v7x)
_TM_MAX = 256                    # M-tile cap for the matmul grid


def _pick_tile(dim, candidates):
    """Largest candidate that evenly divides dim, else the full dim (legal block)."""
    for c in candidates:
        if dim >= c and dim % c == 0:
            return c
    return dim


def _stable_sigmoid(y):
    # exp and the approx reciprocal both ride the EUP slot (free under MXU);
    # clip keeps exp() finite so the epilogue never produces NaN.
    z = jnp.clip(y, -30.0, 30.0)
    return pl.reciprocal(1.0 + jnp.exp(-z), approx=True)


# -----------------------------------------------------------------------------
# Kernel 1: tiled matmul with fused epilogue (bias + act + residual + SE scale).
# -----------------------------------------------------------------------------

def _mm_kernel(*refs, nk, act, has_scale, has_res):
    it = iter(refs)
    x_ref = next(it)
    s_ref = next(it) if has_scale else None
    w_ref = next(it)
    b_ref = next(it)
    res_ref = next(it) if has_res else None
    o_ref = next(it)
    acc_ref = next(it)

    k = pl.program_id(3)

    @pl.when(k == 0)
    def _():
        acc_ref[...] = jnp.zeros_like(acc_ref)

    x = x_ref[0]
    if has_scale:                                   # fused SE channel re-scale
        x = x.astype(jnp.float32) * s_ref[0]
    x = x.astype(jnp.bfloat16)
    acc_ref[...] += jnp.dot(x, w_ref[...].astype(jnp.bfloat16),
                            preferred_element_type=jnp.float32)

    @pl.when(k == nk - 1)
    def _():
        y = acc_ref[...] + b_ref[...]
        if act == "silu":
            y = y * _stable_sigmoid(y)
        elif act == "sigmoid":
            y = _stable_sigmoid(y)
        if has_res:                                 # fused residual add
            y = y + res_ref[0].astype(jnp.float32)
        o_ref[0] = y.astype(o_ref.dtype)


@functools.partial(jax.jit, static_argnames=("act", "out_dtype"))
def matmul_bias_act(x, w, b, *, act="none", scale=None, residual=None,
                    out_dtype=jnp.bfloat16):
    """out[b] = act(x[b] @ w + bias) (+ residual[b]); x: (B, M, K), w: (K, N).

    `scale` (B, K) is multiplied onto the input tile inside the kernel (fused
    squeeze-excitation re-scale for the MBConv project conv).
    """
    B, M, K = x.shape
    N = w.shape[1]

    tm = M if M <= _TM_MAX else _TM_MAX
    if M % tm:                                      # only for large, ragged M
        pad = tm - M % tm
        x = jnp.pad(x, ((0, 0), (0, pad), (0, 0)))
        if residual is not None:
            residual = jnp.pad(residual, ((0, 0), (0, pad), (0, 0)))
    Mp = x.shape[1]
    tk = _pick_tile(K, (512, 256))
    tn = _pick_tile(N, (256, 128))
    nm, nn, nk = Mp // tm, N // tn, K // tk

    inputs = [x]
    in_specs = [pl.BlockSpec((1, tm, tk), lambda bb, i, j, k: (bb, i, k))]
    if scale is not None:
        inputs.append(scale.reshape(B, 1, K).astype(jnp.float32))
        in_specs.append(pl.BlockSpec((1, 1, tk), lambda bb, i, j, k: (bb, 0, k)))
    inputs += [w, b.reshape(1, N).astype(jnp.float32)]
    in_specs += [pl.BlockSpec((tk, tn), lambda bb, i, j, k: (k, j)),
                 pl.BlockSpec((1, tn), lambda bb, i, j, k: (0, j))]
    if residual is not None:
        inputs.append(residual)
        in_specs.append(pl.BlockSpec((1, tm, tn), lambda bb, i, j, k: (bb, i, j)))

    out = pl.pallas_call(
        functools.partial(_mm_kernel, nk=nk, act=act,
                          has_scale=scale is not None,
                          has_res=residual is not None),
        out_shape=jax.ShapeDtypeStruct((B, Mp, N), out_dtype),
        grid=(B, nm, nn, nk),
        in_specs=in_specs,
        out_specs=pl.BlockSpec((1, tm, tn), lambda bb, i, j, k: (bb, i, j)),
        scratch_shapes=[pltpu.VMEM((tm, tn), jnp.float32)],
        compiler_params=pltpu.CompilerParams(
            dimension_semantics=("parallel", "parallel", "parallel", "arbitrary"),
            vmem_limit_bytes=_VMEM_LIMIT),
    )(*inputs)
    return out[:, :M, :] if Mp != M else out


# -----------------------------------------------------------------------------
# Kernel 2: regular 3x3 conv, in-kernel taps (one padded input row per step).
# -----------------------------------------------------------------------------

def _conv3_row_kernel(x_ref, w_ref, b_ref, o_ref, acc_ref, *, wo):
    di = pl.program_id(2)

    @pl.when(di == 0)
    def _():
        acc_ref[...] = jnp.zeros_like(acc_ref)

    row = x_ref[0, 0]                                     # (W+2, Cin) bf16
    part = jnp.dot(row[0:wo, :], w_ref[di * 3 + 0],
                   preferred_element_type=jnp.float32)
    part += jnp.dot(row[1:1 + wo, :], w_ref[di * 3 + 1],
                    preferred_element_type=jnp.float32)
    part += jnp.dot(row[2:2 + wo, :], w_ref[di * 3 + 2],
                    preferred_element_type=jnp.float32)
    acc_ref[...] += part

    @pl.when(di == 2)
    def _():
        y = acc_ref[...] + b_ref[...]
        y = y * _stable_sigmoid(y)                        # SiLU
        o_ref[0, 0] = y.astype(o_ref.dtype)


@functools.partial(jax.jit, static_argnames=("stride",))
def conv3x3_silu(x, w, b, *, stride):
    """3x3 conv (padding=1) + folded BN + SiLU, NHWC, taps formed in-kernel.

    The kernel always runs at stride 1; stride 2 subsamples the stride-1
    output, which is exact for padding=1.
    """
    B, H, W, Cin = x.shape
    Cout = w.shape[-1]
    xp = jnp.pad(x, ((0, 0), (1, 1), (1, 1), (0, 0)))     # (B, H+2, W+2, Cin)
    y = pl.pallas_call(
        functools.partial(_conv3_row_kernel, wo=W),
        out_shape=jax.ShapeDtypeStruct((B, H, W, Cout), jnp.bfloat16),
        grid=(B, H, 3),
        in_specs=[
            pl.BlockSpec((1, 1, W + 2, Cin), lambda bb, p, di: (bb, p + di, 0, 0)),
            pl.BlockSpec((9, Cin, Cout), lambda bb, p, di: (0, 0, 0)),
            pl.BlockSpec((1, Cout), lambda bb, p, di: (0, 0)),
        ],
        out_specs=pl.BlockSpec((1, 1, W, Cout), lambda bb, p, di: (bb, p, 0, 0)),
        scratch_shapes=[pltpu.VMEM((W, Cout), jnp.float32)],
        compiler_params=pltpu.CompilerParams(
            dimension_semantics=("parallel", "parallel", "arbitrary"),
            vmem_limit_bytes=_VMEM_LIMIT),
    )(xp, w, b.reshape(1, Cout).astype(jnp.float32))
    if stride == 2:
        y = y[:, ::2, ::2, :]
    return y


# -----------------------------------------------------------------------------
# Kernel 3: depthwise 3x3 conv, in-kernel taps, fused bias + SiLU.
# -----------------------------------------------------------------------------

def _dw_kernel(x_ref, w_ref, b_ref, o_ref, *, ho, wo):
    x = x_ref[0].astype(jnp.float32)                      # (H+2, W+2, Ct)
    acc = jnp.zeros((ho, wo, x.shape[-1]), jnp.float32)
    for t in range(9):
        di, dj = divmod(t, 3)
        acc = acc + x[di:di + ho, dj:dj + wo, :] * w_ref[t]
    acc = acc + b_ref[...]
    acc = acc * _stable_sigmoid(acc)                      # SiLU
    o_ref[0] = acc.astype(o_ref.dtype)


@functools.partial(jax.jit, static_argnames=("stride",))
def dwconv3x3_silu(x, w, b, *, stride):
    """Depthwise 3x3 conv (padding=1) + folded BN + SiLU, NHWC.

    One padded (H+2, W+2, Ct) tile per (batch, channel-tile) grid cell; the 9
    taps are static shifted slices inside the kernel -- no tap blow-up in HBM.
    Stride 2 subsamples the stride-1 output (exact for padding=1).
    """
    B, H, W, C = x.shape
    xp = jnp.pad(x, ((0, 0), (1, 1), (1, 1), (0, 0)))
    tc = _pick_tile(C, (256, 128))
    nc = C // tc
    y = pl.pallas_call(
        functools.partial(_dw_kernel, ho=H, wo=W),
        out_shape=jax.ShapeDtypeStruct((B, H, W, C), jnp.bfloat16),
        grid=(B, nc),
        in_specs=[
            pl.BlockSpec((1, H + 2, W + 2, tc), lambda bb, j: (bb, 0, 0, j)),
            pl.BlockSpec((9, 1, 1, tc), lambda bb, j: (0, 0, 0, j)),
            pl.BlockSpec((1, 1, tc), lambda bb, j: (0, 0, j)),
        ],
        out_specs=pl.BlockSpec((1, H, W, tc), lambda bb, j: (bb, 0, 0, j)),
        compiler_params=pltpu.CompilerParams(
            dimension_semantics=("parallel", "parallel"),
            vmem_limit_bytes=_VMEM_LIMIT),
    )(xp, w, b.reshape(1, 1, C).astype(jnp.float32))
    if stride == 2:
        y = y[:, ::2, ::2, :]
    return y


# -----------------------------------------------------------------------------
# Kernel 4: global average pool, tiled over HW with an output accumulator.
# -----------------------------------------------------------------------------

def _gap_kernel(x_ref, o_ref, *, nk, inv_n):
    k = pl.program_id(0)

    @pl.when(k == 0)
    def _():
        o_ref[...] = jnp.zeros_like(o_ref)

    o_ref[...] += jnp.sum(x_ref[...].astype(jnp.float32), axis=1)

    @pl.when(k == nk - 1)
    def _():
        o_ref[...] = o_ref[...] * inv_n


@jax.jit
def global_avg_pool(x):
    """x: (B, HW, C) -> (B, C) f32 mean over HW (SE squeeze and head pool)."""
    B, HW, C = x.shape
    thw = HW if HW <= 1024 else _pick_tile(HW, (512, 256, 128, 64, 32, 16, 8))
    nk = HW // thw
    return pl.pallas_call(
        functools.partial(_gap_kernel, nk=nk, inv_n=1.0 / HW),
        out_shape=jax.ShapeDtypeStruct((B, C), jnp.float32),
        grid=(nk,),
        in_specs=[pl.BlockSpec((B, thw, C), lambda k: (0, k, 0))],
        out_specs=pl.BlockSpec((B, C), lambda k: (0, 0)),
        compiler_params=pltpu.CompilerParams(
            dimension_semantics=("arbitrary",),
            vmem_limit_bytes=_VMEM_LIMIT),
    )(x)


# -----------------------------------------------------------------------------
# EfficientNetV2-S architecture config.
# -----------------------------------------------------------------------------

# (block_type, expand_ratio, kernel, stride, in_ch, out_ch, num_layers)
_STAGES = [
    ("fused", 1, 3, 1, 24, 24, 2),
    ("fused", 4, 3, 2, 24, 48, 4),
    ("fused", 4, 3, 2, 48, 64, 4),
    ("mb",    4, 3, 2, 64, 128, 6),
    ("mb",    6, 3, 1, 128, 160, 9),
    ("mb",    6, 3, 2, 160, 256, 15),
]
_LAST_CHANNEL = 1280
_NUM_CLASSES = 7


def _block_configs():
    cfgs = []
    for btype, expand, k, s, cin, cout, n in _STAGES:
        for li in range(n):
            bin_ = cin if li == 0 else cout
            stride = s if li == 0 else 1
            cfgs.append(dict(type=btype, expand=expand, kernel=k, stride=stride,
                             cin=bin_, cout=cout,
                             use_res=(stride == 1 and bin_ == cout)))
    return cfgs


_BLOCK_CFGS = _block_configs()

# -----------------------------------------------------------------------------
# Deterministic synthetic parameters (eval-mode BN folded into conv w/b),
# pre-shaped and pre-cast once at init (no per-call padding round trips).
# -----------------------------------------------------------------------------

_BN_EPS = 1e-3
_BN_SCALE = 1.0 / math.sqrt(1.0 + _BN_EPS)   # gamma=1, beta=0, mean=0, var=1


def _conv_bn(key, kh, kw, cin, cout):
    std = 1.0 / math.sqrt(kh * kw * cin)
    w = jax.random.normal(key, (kh, kw, cin, cout), jnp.float32) * std * _BN_SCALE
    if kh == 1 and kw == 1:
        w = w.reshape(cin, cout)             # 1x1 conv == matmul weight
    else:
        w = w.reshape(kh * kw, cin, cout)    # 3x3 conv -> (9, Cin, Cout) taps
    return {"w": w.astype(jnp.bfloat16), "b": jnp.zeros((cout,), jnp.float32)}


def _dense(key, cin, cout, bias_scale=0.01):
    kw_, kb_ = jax.random.split(key)
    w = jax.random.normal(kw_, (cin, cout), jnp.float32) / math.sqrt(cin)
    b = jax.random.normal(kb_, (cout,), jnp.float32) * bias_scale
    return w.astype(jnp.bfloat16), b


def init_params(key):
    keys = iter(jax.random.split(key, 256))
    params = {"stem": _conv_bn(next(keys), 3, 3, 3, 24), "blocks": []}
    for cfg in _BLOCK_CFGS:
        cin, cout, k = cfg["cin"], cfg["cout"], cfg["kernel"]
        exp_c = cin * cfg["expand"]
        blk = {}
        if cfg["type"] == "fused":
            if cfg["expand"] != 1:
                blk["expand"] = _conv_bn(next(keys), k, k, cin, exp_c)
                blk["project"] = _conv_bn(next(keys), 1, 1, exp_c, cout)
            else:
                blk["project"] = _conv_bn(next(keys), k, k, cin, cout)
        else:
            sq = max(1, cin // 4)
            blk["expand"] = _conv_bn(next(keys), 1, 1, cin, exp_c)
            dw_w = (jax.random.normal(next(keys), (3, 3, exp_c), jnp.float32)
                    / 3.0 * _BN_SCALE).reshape(9, 1, 1, exp_c)
            blk["dw"] = {"w": dw_w, "b": jnp.zeros((exp_c,), jnp.float32)}
            f1w, f1b = _dense(next(keys), exp_c, sq)
            f2w, f2b = _dense(next(keys), sq, exp_c)
            blk["se"] = {"fc1_w": f1w, "fc1_b": f1b, "fc2_w": f2w, "fc2_b": f2b}
            blk["project"] = _conv_bn(next(keys), 1, 1, exp_c, cout)
        params["blocks"].append(blk)
    params["head"] = _conv_bn(next(keys), 1, 1, _STAGES[-1][5], _LAST_CHANNEL)
    vw, vb = _dense(next(keys), _LAST_CHANNEL, _NUM_CLASSES)
    params["vertebrae"] = {"w": vw, "b": vb}
    return params


# -----------------------------------------------------------------------------
# Forward pass (== SegEffnetModel.forward): returns (B, 7) vertebrae logits.
# -----------------------------------------------------------------------------

def effnet_forward(params, x_nchw):
    x = jnp.transpose(x_nchw, (0, 2, 3, 1)).astype(jnp.bfloat16)    # NCHW -> NHWC
    x = conv3x3_silu(x, params["stem"]["w"], params["stem"]["b"], stride=2)

    for cfg, bp in zip(_BLOCK_CFGS, params["blocks"]):
        inp = x
        if cfg["type"] == "fused":
            if cfg["expand"] != 1:
                h = conv3x3_silu(x, bp["expand"]["w"], bp["expand"]["b"],
                                 stride=cfg["stride"])
                B, H, W, Ce = h.shape
                res = inp.reshape(1, B * H * W, -1) if cfg["use_res"] else None
                x = matmul_bias_act(h.reshape(1, B * H * W, Ce),
                                    bp["project"]["w"], bp["project"]["b"],
                                    act="none", residual=res).reshape(B, H, W, -1)
            else:
                y = conv3x3_silu(x, bp["project"]["w"], bp["project"]["b"],
                                 stride=cfg["stride"])
                # Residual of the two expand==1 stage-1 blocks stays in XLA
                # (24-channel 8x8 tensors; not worth a kernel variant).
                x = y + inp if cfg["use_res"] else y
        else:  # MBConv: expand 1x1 -> depthwise 3x3 -> SE -> project 1x1
            B, H, W, Cin = x.shape
            h = matmul_bias_act(x.reshape(1, B * H * W, Cin),
                                bp["expand"]["w"], bp["expand"]["b"],
                                act="silu").reshape(B, H, W, -1)
            d = dwconv3x3_silu(h, bp["dw"]["w"], bp["dw"]["b"], stride=cfg["stride"])
            Bd, Hd, Wd, Ce = d.shape
            s = global_avg_pool(d.reshape(Bd, Hd * Wd, Ce))          # (B, Ce) f32
            s = matmul_bias_act(s.reshape(1, Bd, Ce), bp["se"]["fc1_w"],
                                bp["se"]["fc1_b"], act="silu",
                                out_dtype=jnp.float32)
            s = matmul_bias_act(s, bp["se"]["fc2_w"], bp["se"]["fc2_b"],
                                act="sigmoid", out_dtype=jnp.float32)
            s = s.reshape(Bd, Ce)
            res = inp.reshape(Bd, Hd * Wd, -1) if cfg["use_res"] else None
            x = matmul_bias_act(d.reshape(Bd, Hd * Wd, Ce),
                                bp["project"]["w"], bp["project"]["b"],
                                act="none", scale=s, residual=res
                                ).reshape(Bd, Hd, Wd, -1)

    # head: 1x1 conv (SiLU) -> adaptive avg pool -> flatten -> Linear(1280, 7)
    B, H, W, C = x.shape
    x = matmul_bias_act(x.reshape(1, B * H * W, C),
                        params["head"]["w"], params["head"]["b"],
                        act="silu").reshape(B, H, W, -1)
    feat = global_avg_pool(x.reshape(B, H * W, _LAST_CHANNEL))       # (B, 1280) f32
    logits = matmul_bias_act(feat.reshape(1, B, _LAST_CHANNEL),
                             params["vertebrae"]["w"], params["vertebrae"]["b"],
                             act="none", out_dtype=jnp.float32)
    return logits[0]                                                 # (B, 7)


if __name__ == "__main__":
    key = jax.random.PRNGKey(0)
    pkey, xkey = jax.random.split(key)
    params = init_params(pkey)
    x = jax.random.normal(xkey, (2, 3, 16, 16), jnp.float32)   # NCHW like torch
    logits = effnet_forward(params, x)
    jax.block_until_ready(logits)
    assert logits.shape == (2, _NUM_CLASSES)
    assert bool(jnp.all(jnp.isfinite(logits)))
    print("KERNEL_OK")
</pallas_src>

<mosaic_0001>
module attributes {stable_mosaic.version = 11 : i64} {
  func.func @_conv3_row_kernel(%arg0: i32, %arg1: i32, %arg2: i32, %arg3: memref<1x1x18x3xbf16, #tpu.memory_space<vmem>>, %arg4: memref<9x3x24xbf16, #tpu.memory_space<vmem>>, %arg5: memref<1x24xf32, #tpu.memory_space<vmem>>, %arg6: memref<1x1x16x24xbf16, #tpu.memory_space<vmem>>, %arg7: memref<16x24xf32, #tpu.memory_space<vmem>>) attributes {dimension_semantics = [#tpu.dimension_semantics<parallel>, #tpu.dimension_semantics<parallel>, #tpu.dimension_semantics<arbitrary>], iteration_bounds = array<i64: 2, 16, 3>, scalar_prefetch = 0 : i64, scratch_operands = 1 : i64, tpu.core_type = #tpu.core_type<tc>, window_params = [{transform_indices = @transform_0, window_bounds = array<i64: 1, 1, 18, 3>}, {pipeline_mode = #tpu.pipeline_mode<synchronous>, transform_indices = @transform_1, window_bounds = array<i64: 9, 3, 24>}, {pipeline_mode = #tpu.pipeline_mode<synchronous>, transform_indices = @transform_2, window_bounds = array<i64: 1, 24>}, {transform_indices = @transform_3, window_bounds = array<i64: 1, 1, 16, 24>}]} {
    %c0_i32 = arith.constant 0 : i32
    %0 = arith.cmpi eq, %arg2, %c0_i32 : i32
    %1 = arith.extui %0 : i1 to i32
    %c0_i32_0 = arith.constant 0 : i32
    %2 = arith.cmpi ne, %1, %c0_i32_0 : i32
    scf.if %2 {
      %cst_21 = arith.constant 0.000000e+00 : f32
      %34 = vector.broadcast %cst_21 : f32 to vector<16x24xf32>
      %c0_22 = arith.constant 0 : index
      %c0_23 = arith.constant 0 : index
      %35 = vector.load %arg7[%c0_22, %c0_23] : memref<16x24xf32, #tpu.memory_space<vmem>>, vector<16x24xf32>
      tpu.vector_store %arg7[%c0_22, %c0_23], %34 {strides = array<i32>} : memref<16x24xf32, #tpu.memory_space<vmem>>, vector<16x24xf32>,
    } else {
    }
    %c0 = arith.constant 0 : index
    %c0_1 = arith.constant 0 : index
    %c0_2 = arith.constant 0 : index
    %c0_3 = arith.constant 0 : index
    %3 = vector.load %arg3[%c0, %c0_1, %c0_2, %c0_3] : memref<1x1x18x3xbf16, #tpu.memory_space<vmem>>, vector<1x1x18x3xbf16>
    %4 = vector.shape_cast %3 : vector<1x1x18x3xbf16> to vector<18x3xbf16>
    %5 = vector.extract_strided_slice %4 {offsets = [0, 0], sizes = [16, 3], strides = [1, 1]} : vector<18x3xbf16> to vector<16x3xbf16>
    %c3_i32 = arith.constant 3 : i32
    %6 = arith.muli %arg2, %c3_i32 : i32
    %c0_i32_4 = arith.constant 0 : i32
    %7 = arith.addi %6, %c0_i32_4 : i32
    %8 = arith.index_cast %7 : i32 to index
    %c0_5 = arith.constant 0 : index
    %c0_6 = arith.constant 0 : index
    %9 = vector.load %arg4[%8, %c0_5, %c0_6] : memref<9x3x24xbf16, #tpu.memory_space<vmem>>, vector<1x3x24xbf16>
    %10 = vector.shape_cast %9 : vector<1x3x24xbf16> to vector<3x24xbf16>
    %cst = arith.constant dense<0.000000e+00> : vector<16x24xf32>
    %11 = tpu.matmul %5, %10, %cst {dimension_numbers = #tpu.dot_dimension_numbers<[1], [0], [0], [1], [0, 0, 1, 1], [], []>} : vector<16x3xbf16>, vector<3x24xbf16>, vector<16x24xf32> -> vector<16x24xf32>
    %12 = vector.extract_strided_slice %4 {offsets = [1, 0], sizes = [16, 3], strides = [1, 1]} : vector<18x3xbf16> to vector<16x3xbf16>
    %c3_i32_7 = arith.constant 3 : i32
    %13 = arith.muli %arg2, %c3_i32_7 : i32
    %c1_i32 = arith.constant 1 : i32
    %14 = arith.addi %13, %c1_i32 : i32
    %15 = arith.index_cast %14 : i32 to index
    %c0_8 = arith.constant 0 : index
    %c0_9 = arith.constant 0 : index
    %16 = vector.load %arg4[%15, %c0_8, %c0_9] : memref<9x3x24xbf16, #tpu.memory_space<vmem>>, vector<1x3x24xbf16>
    %17 = vector.shape_cast %16 : vector<1x3x24xbf16> to vector<3x24xbf16>
    %cst_10 = arith.constant dense<0.000000e+00> : vector<16x24xf32>
    %18 = tpu.matmul %12, %17, %cst_10 {dimension_numbers = #tpu.dot_dimension_numbers<[1], [0], [0], [1], [0, 0, 1, 1], [], []>} : vector<16x3xbf16>, vector<3x24xbf16>, vector<16x24xf32> -> vector<16x24xf32>
    %19 = arith.addf %11, %18 : vector<16x24xf32>
    %20 = vector.extract_strided_slice %4 {offsets = [2, 0], sizes = [16, 3], strides = [1, 1]} : vector<18x3xbf16> to vector<16x3xbf16>
    %c3_i32_11 = arith.constant 3 : i32
    %21 = arith.muli %arg2, %c3_i32_11 : i32
    %c2_i32 = arith.constant 2 : i32
    %22 = arith.addi %21, %c2_i32 : i32
    %23 = arith.index_cast %22 : i32 to index
    %c0_12 = arith.constant 0 : index
    %c0_13 = arith.constant 0 : index
    %24 = vector.load %arg4[%23, %c0_12, %c0_13] : memref<9x3x24xbf16, #tpu.memory_space<vmem>>, vector<1x3x24xbf16>
    %25 = vector.shape_cast %24 : vector<1x3x24xbf16> to vector<3x24xbf16>
    %cst_14 = arith.constant dense<0.000000e+00> : vector<16x24xf32>
    %26 = tpu.matmul %20, %25, %cst_14 {dimension_numbers = #tpu.dot_dimension_numbers<[1], [0], [0], [1], [0, 0, 1, 1], [], []>} : vector<16x3xbf16>, vector<3x24xbf16>, vector<16x24xf32> -> vector<16x24xf32>
    %27 = arith.addf %19, %26 : vector<16x24xf32>
    %c0_15 = arith.constant 0 : index
    %c0_16 = arith.constant 0 : index
    %28 = vector.load %arg7[%c0_15, %c0_16] : memref<16x24xf32, #tpu.memory_space<vmem>>, vector<16x24xf32>
    %29 = arith.addf %28, %27 : vector<16x24xf32>
    %c0_17 = arith.constant 0 : index
    %c0_18 = arith.constant 0 : index
    %30 = vector.load %arg7[%c0_17, %c0_18] : memref<16x24xf32, #tpu.memory_space<vmem>>, vector<16x24xf32>
    tpu.vector_store %arg7[%c0_17, %c0_18], %29 {strides = array<i32>} : memref<16x24xf32, #tpu.memory_space<vmem>>, vector<16x24xf32>,
    %c2_i32_19 = arith.constant 2 : i32
    %31 = arith.cmpi eq, %arg2, %c2_i32_19 : i32
    %32 = arith.extui %31 : i1 to i32
    %c0_i32_20 = arith.constant 0 : i32
    %33 = arith.cmpi ne, %32, %c0_i32_20 : i32
    scf.if %33 {
      %c0_21 = arith.constant 0 : index
      %c0_22 = arith.constant 0 : index
      %34 = vector.load %arg7[%c0_21, %c0_22] : memref<16x24xf32, #tpu.memory_space<vmem>>, vector<16x24xf32>
      %c0_23 = arith.constant 0 : index
      %c0_24 = arith.constant 0 : index
      %35 = vector.load %arg5[%c0_23, %c0_24] : memref<1x24xf32, #tpu.memory_space<vmem>>, vector<1x24xf32>
      %36 = vector.broadcast %35 : vector<1x24xf32> to vector<16x24xf32>
      %37 = arith.addf %34, %36 : vector<16x24xf32>
      %cst_25 = arith.constant -3.000000e+01 : f32
      %cst_26 = arith.constant 3.000000e+01 : f32
      %38 = vector.broadcast %cst_25 : f32 to vector<16x24xf32>
      %39 = arith.maximumf %38, %37 : vector<16x24xf32>
      %40 = vector.broadcast %cst_26 : f32 to vector<16x24xf32>
      %41 = arith.minimumf %40, %39 : vector<16x24xf32>
      %cst_27 = arith.constant 0.000000e+00 : f32
      %42 = vector.broadcast %cst_27 : f32 to vector<16x24xf32>
      %43 = arith.subf %42, %41 : vector<16x24xf32>
      %44 = math.exp %43 : vector<16x24xf32>
      %cst_28 = arith.constant 1.000000e+00 : f32
      %45 = vector.broadcast %cst_28 : f32 to vector<16x24xf32>
      %46 = arith.addf %45, %44 : vector<16x24xf32>
      %47 = tpu.reciprocal %46 {approx = true} : vector<16x24xf32> -> vector<16x24xf32>
      %48 = arith.mulf %37, %47 : vector<16x24xf32>
      %49 = arith.truncf %48 : vector<16x24xf32> to vector<16x24xbf16>
      %c0_29 = arith.constant 0 : index
      %c0_30 = arith.constant 0 : index
      %c0_31 = arith.constant 0 : index
      %c0_32 = arith.constant 0 : index
      %50 = vector.load %arg6[%c0_29, %c0_30, %c0_31, %c0_32] : memref<1x1x16x24xbf16, #tpu.memory_space<vmem>>, vector<1x1x16x24xbf16>
      %51 = vector.shape_cast %50 : vector<1x1x16x24xbf16> to vector<16x24xbf16>
      %52 = vector.shape_cast %49 : vector<16x24xbf16> to vector<1x1x16x24xbf16>
      tpu.vector_store %arg6[%c0_29, %c0_30, %c0_31, %c0_32], %52 {strides = array<i32>} : memref<1x1x16x24xbf16, #tpu.memory_space<vmem>>, vector<1x1x16x24xbf16>,
    } else {
    }
    return
  }
  func.func @transform_0(%arg0: i32, %arg1: i32, %arg2: i32) -> (i32, i32, i32, i32) {
    %0 = arith.addi %arg1, %arg2 : i32
    %c0_i32 = arith.constant 0 : i32
    %c0_i32_0 = arith.constant 0 : i32
    %c0_i32_1 = arith.constant 0 : i32
    return %arg0, %0, %c0_i32, %c0_i32_0 : i32, i32, i32, i32
  }
  func.func @transform_1(%arg0: i32, %arg1: i32, %arg2: i32) -> (i32, i32, i32) {
    %c0_i32 = arith.constant 0 : i32
    %c0_i32_0 = arith.constant 0 : i32
    %c0_i32_1 = arith.constant 0 : i32
    %c0_i32_2 = arith.constant 0 : i32
    return %c0_i32, %c0_i32_0, %c0_i32_1 : i32, i32, i32
  }
  func.func @transform_2(%arg0: i32, %arg1: i32, %arg2: i32) -> (i32, i32) {
    %c0_i32 = arith.constant 0 : i32
    %c0_i32_0 = arith.constant 0 : i32
    %c0_i32_1 = arith.constant 0 : i32
    return %c0_i32, %c0_i32_0 : i32, i32
  }
  func.func @transform_3(%arg0: i32, %arg1: i32, %arg2: i32) -> (i32, i32, i32, i32) {
    %c0_i32 = arith.constant 0 : i32
    %c0_i32_0 = arith.constant 0 : i32
    %c0_i32_1 = arith.constant 0 : i32
    return %arg0, %arg1, %c0_i32, %c0_i32_0 : i32, i32, i32, i32
  }
}

</mosaic_0001>

<bundles_post_ra>
// kernel: conv3x3_silu.1
= control target key start
LH: loop header
LB: loop body
LE: loop exit
PB: predicated region body
PF: predicated region fallthrough
CT: control target
= control target key end

     0   :  { %s783_s12 = smov 0   ;;  %s785_s13 = smov 0   ;;  %s879_s0 = inlined_call_operand.vmem [shape: bf16[2,18,18,3], index: 0, kind: input, shape index: {}]   ;;  %s880_s1 = inlined_call_operand.vmem [shape: bf16[9,3,24], index: 1, kind: input, shape index: {}]   ;;  %s881_s2 = inlined_call_operand.vmem [shape: f32[1,24], index: 2, kind: input, shape index: {}]   ;;  %s882_s3 = inlined_call_operand.vmem [shape: bf16[2,16,16,24], index: 3, kind: output, shape index: {}]  }
   0x1   :  { %s787_s14 = smov 0   ;;  %s789_s15 = smov 0  }
   0x2   :  { %s791_s16 = smov 0   ;;  %s793_s17 = smov 0  }
   0x3   :  { %s795_s18 = smov 0  }
   0x4 LB: > { %s25_s19 = sadd.s32 1, %s745_s15  ;;  %s28_s20 = sadd.s32 1, %s749_s16  ;;  %s757_s18 = sphi %s795_s18, %s13_s18   ;;  %s753_s17 = sphi %s793_s17, %s888_s17   ;;  %s749_s16 = sphi %s791_s16, %s887_s16   ;;  %s745_s15 = sphi %s789_s15, %s886_s15   ;;  %s741_s14 = sphi %s787_s14, %s885_s14   ;;  %s737_s13 = sphi %s785_s13, %s884_s13   ;;  %s733_s12 = sphi %s783_s12, %s883_s12  }
   0x5   : > { %p26_p0 = scmp.ge.s32.totalorder %s25_s19, 3  ;;  %p580_p1 = scmp.ge.s32.totalorder %s757_s18, 1 }
   0x6   : > { %p168_p2 = scmp.lt.s32.totalorder %s757_s18, 97  ;;  %s32_s21 = sadd.s32 1, %s753_s17 }
   0x7   : > { %s890_s19 = smov (%p26_p0, %s25_s19), 0  ;;  %s892_s20 = smov (!%p26_p0, %s28_s20), %s749_s16 }
   0x8   : > { %p169_p3 = pnand %p580_p1, %p168_p2  ;;  %p30_p4 = scmp.ge.s32.totalorder %s892_s20, 16 }
   0x9   : > { %s201_s22 = sadd.s32 (!%p169_p3), %s733_s12, %s737_s13  ;;  %p202_p6 = scmp.lt.s32.totalorder (!%p169_p3), %s741_s14, 1 }
   0xa   : > { %s894_s20 = smov (%p30_p4, %s892_s20), 0  ;;  %s896_s21 = smov (!%p30_p4, %s32_s21), %s753_s17 }
   0xb   : > { %p34_p5 = scmp.ge.s32.totalorder %s896_s21, 2  ;;  %172 = sbr.rel (%p169_p3) target bundleno = 308 (0x134), region = 32 }
   0xc   : > { %p204_p7 = scmp.lt.s32.totalorder (!%p169_p3), %s201_s22, 17  ;;  %p214_p8 = scmp.lt.s32.totalorder (!%p169_p3), %s737_s13, 15 }
   0xd   : > { %s898_s21 = smov (%p34_p5, %s896_s21), 0  ;;  %p585_p9 = scmp.ne.s32.totalorder (!%p169_p3), %s733_s12, 0 }
  0x12   : > { %s900_s14 = smov (!%p202_p6, %s741_s14), 1  ;;  %s902_s22 = smov (!%p204_p7, %s201_s22), 17 }
  0x13   : > { %s632_s23 = smul.u32 54, %s900_s14  ;;  %s583_s25 = sshll.u32 %s900_s14, 5  ;;  %vm226_vm0 = vcmask (!%p585_p9), 195584   ;;  %v759_v0 = vmov (!%p585_p9), 0.0  }
  0x14   : > { %s631_s24 = smul.u32 3, %s902_s22  ;;  %s904_s13 = smov (!%p214_p8, %s737_s13), 15  ;;  %227 = vst.msk [vmem:[#allocation2] sm:$0xff] (!%p585_p9), %vm226_vm0, %v759_v0  ;;  %228 = vst.msk [vmem:[#allocation2 + $0x8] sm:$0xff] (!%p585_p9), %vm226_vm0, %v759_v0 }
  0x15   : > { %s582_s28 = sshll.u32 %s904_s13, 1  ;;  %225 = sbr.rel (%p585_p9) target bundleno = 28 (0x1c), region = 36 }
  0x16   : > { %s208_s26 = sadd.s32 %s632_s23, %s631_s24  ;;  %s218_s5 = sadd.s32 %s583_s25, %s582_s28 }
  0x17   : > { %s581_s27 = sshll.u32 %s208_s26, 2  ;;  %s584_s6 = sshll.u32 %s218_s5, 2 }
  0x18   : > { %s210_s4 = scalar_lea.vmem %s879_s0, %s581_s27  ;;  %s839_s9 = scalar_lea.vmem %s882_s3, %s584_s6 }
  0x1c PF: > { %s604_s10 = smul.u32 6, %s733_s12  ;;  %vm265_vm1 = vcmask 1040384   ;;  %vm266_vm2 = vcmask 1041408   ;;  %v693_v1 = vld [vmem:[%s210_s4] sm:$0xff]   ;;  %v760_v2 = vmov 0.0   ;;  %v761_v3 = vmov 65535  }
  0x1d   : > { %613 = vmatprep.subr.bf16.mxu0 %v760_v2  ;;  %v267_v4 = vsel %vm265_vm1, 4294967295, %v761_v3  ;;  %619 = vmatprep.subr.bf16.mxu1 %v760_v2  ;;  %vm762_vm3 = vmmov 0   ;;  %v694_v6 = vld [vmem:[%s210_s4 + $0x8] ss:$0 sps:$4 sm:$0x11]   ;;  %v250_v11 = vshrl.u32 %v693_v1, 16 }
  0x1e   : > { %s234_s14 = scalar_lea.vmem %s880_s1, %s604_s10  ;;  %v268_v5 = vsel %vm266_vm2, %v267_v4, 0  ;;  %615 = vmatprep.mubr.msk.bf16.mxu0 %vm762_vm3, %v760_v2  ;;  %621 = vmatprep.mubr.msk.bf16.mxu1 %vm762_vm3, %v760_v2  ;;  %v252_v12 = vshll.u32 %v693_v1, 16  ;;  %v257_v13 = vshll.u32 %v694_v6, 16  ;;  %vm261_vm4 = vcmask 23552   ;;  %v416_v34 = vld [vmem:[#allocation2] sm:$0xff]  ;;  %v417_v38 = vld [vmem:[#allocation2 + $0x8] sm:$0xff] }
  0x1f   : > { %v588_v7 = vld [vmem:[%s234_s14 + $0x2] sm:$0x3]  ;;  %v235_v8 = vld [vmem:[%s234_s14] sm:$0x3]  ;;  %v594_v14 = vld [vmem:[%s234_s14 + $0x4] sm:$0x3] }
  0x20   : > { %v270_v9 = vand.u32 %v588_v7, %v268_v5  ;;  %v316_v10 = vand.u32 %v268_v5, %v235_v8  ;;  %v254_v15 = vrot.slane %v252_v12, 1  ;;  %v259_v16 = vrot.slane %v257_v13, 1  ;;  %p596_p10 = scmp.ne.s32.totalorder %s733_s12, 2 }
  0x21   : > { %vm248_vm5 = vsmask.f32 7424  ;;  %v371_v17 = vand.u32 %v594_v14, %v268_v5  ;;  %v364_v20 = vrot.slane %v693_v1, 1  ;;  %v365_v21 = vrot.slane %v694_v6, 1  ;;  %v597_v44 = vld [vmem:[%s881_s2] ss:$0 sm:$0xff] (!%p596_p10) }
  0x22   : > { %614 = vmatpush3.bf16.msra.mxu0 %v270_v9  ;;  %620 = vmatpush3.bf16.msra.mxu1 %v316_v10  ;;  %v255_v18 = vor.u32 %v254_v15, %v250_v11  ;;  %vm363_vm6 = vcmask 1046528   ;;  %vm420_vm7 = vcmask 195584   ;;  %vm462_vm8 = vcmask (!%p596_p10), 191488  }
  0x23   : > { %625 = vmatprep.subr.bf16.mxu0 %v760_v2  ;;  %v366_v22 = vsel %vm363_vm6, %v364_v20, %v365_v21 }
  0x24   : > { %v260_v19 = vsel %vm248_vm5, %v255_v18, %v259_v16 }
  0x25   : > { %622 = vmatmul.mubr.msk.bf16.vlgmr.msra.gmra.mrb[0].mxu1 %vm261_vm4, %v693_v1  ;;  %616 = vmatmul.mubr.msk.bf16.vlgmr.msra.gmra.mrb[0].mxu0 %vm261_vm4, %v260_v19 }
  0x26   : > { %626 = vmatpush3.bf16.msra.mxu0 %v371_v17  ;;  %627 = vmatprep.mubr.msk.bf16.mxu0 %vm762_vm3, %v760_v2 }
  0x2d   : > { %628 = vmatmul.mubr.msk.bf16.vlgmr.msra.gmra.mrb[4].mxu0 %vm261_vm4, %v366_v22 }
  0xf8   : > { %v352_v23 = vpop.f32.mrb[0].mxu1  ;;  %v306_v26 = vpop.f32.mrb[0].mxu0 }
  0xf9   : > { %v623_v24 = vpop.f32.mrb[1].mxu1  ;;  %v353_v28 = vadd.f32 %v352_v23, %v306_v26  ;;  %v617_v29 = vpop.f32.mrb[1].mxu0 }
  0xfa   : > { %v355_v25 = vpop.f32.mrb[2].mxu1  ;;  %v309_v30 = vpop.f32.mrb[2].mxu0 }
  0xfb   : > { %v624_v27 = vpop.f32.mrb[3].mxu1  ;;  %v356_v31 = vadd.f32 %v355_v25, %v309_v30  ;;  %v618_v32 = vpop.f32.mrb[3].mxu0 }
 0x100   : > { %v407_v33 = vpop.f32.mrb[4].mxu0 }
 0x101   : > { %v414_v35 = vadd.f32 %v407_v33, %v353_v28  ;;  %v629_v36 = vpop.f32.mrb[5].mxu0  ;;  %426 = sbr.rel (%p596_p10) target bundleno = 308 (0x134), region = 40 }
 0x102   : > { %v410_v37 = vpop.f32.mrb[6].mxu0 }
 0x103   : > { %v418_v39 = vadd.f32 %v416_v34, %v414_v35  ;;  %v415_v40 = vadd.f32 %v410_v37, %v356_v31  ;;  %v630_v41 = vpop.f32.mrb[7].mxu0 }
 0x105   : > { %421 = vst.msk [vmem:[#allocation2] sm:$0xff] %vm420_vm7, %v418_v39  ;;  %v419_v42 = vadd.f32 %v417_v38, %v415_v40 }
 0x107   : > { %422 = vst.msk [vmem:[#allocation2 + $0x8] sm:$0xff] %vm420_vm7, %v419_v42 }
 0x10c   : > { %v427_v43 = vld [vmem:[#allocation2] sm:$0xff] }
 0x10d   : > { %v436_v46 = vadd.f32 %v597_v44, %v427_v43 }
 0x10e   : > { %v428_v45 = vld [vmem:[#allocation2 + $0x8] sm:$0xff] }
 0x10f   : > { %v437_v47 = vadd.f32 %v597_v44, %v428_v45  ;;  %v598_v48 = vclamps-f32 %v436_v46, 30.0 }
 0x111   : > { %v599_v49 = vclamps-f32 %v437_v47, 30.0  ;;  %v442_v50 = vsub.f32 0.0, %v598_v48 }
 0x113   : > { %v443_v51 = vsub.f32 0.0, %v599_v49  ;;  %v444_v52 = vmul.f32 1.442695, %v442_v50 }
 0x115   : > { %v446_v53 = vmul.f32 1.442695, %v443_v51  ;;  %695 = vpow2.f32 %v444_v52 }
 0x117   : > { %697 = vpow2.f32 %v446_v53 }
 0x11f   : > { %v696_v54 = vpop.eup %695 }
 0x120   : > { %v448_v56 = vadd.f32 1.0, %v696_v54 }
 0x121   : > { %v698_v55 = vpop.eup %697 }
 0x122   : > { %v449_v57 = vadd.f32 1.0, %v698_v55  ;;  %699 = vrcp.f32 %v448_v56 }
 0x124   : > { %701 = vrcp.f32 %v449_v57 }
 0x12c   : > { %v700_v58 = vpop.eup %699 }
 0x12d   : > { %v452_v60 = vmul.f32 %v700_v58, %v436_v46 }
 0x12e   : > { %v702_v59 = vpop.eup %701 }
 0x12f   : > { %v453_v61 = vmul.f32 %v702_v59, %v437_v47  ;;  %v605_v62 = vpack.c.bf16 %v452_v60, %v452_v60 }
 0x131   : > { %v606_v63 = vpack.c.bf16 %v453_v61, %v453_v61  ;;  %463 = vst.msk [vmem:[%s839_s9] sm:$0xf] %vm462_vm8, %v605_v62 }
 0x133   : > { %464 = vst.msk [vmem:[%s839_s9 + $0x4] sm:$0xf] %vm462_vm8, %v606_v63 }
 0x134 PF: > { %s13_s18 = sadd.s32 1, %s757_s18   ;;  %s883_s12 = smov %s745_s15 }
 0x135   : > { %p10_p11 = scmp.ge.s32.totalorder %s13_s18, 98   ;;  %s884_s13 = smov %s749_s16 }
 0x136   : > { %s885_s14 = smov %s753_s17  ;;  %s886_s15 = smov %s890_s19 }
 0x137   : > { %s887_s16 = smov %s894_s20  ;;  %s888_s17 = smov %s898_s21 }
 0x138   :  { %12 = sbr.rel (!%p10_p11) target bundleno = 4 (0x4), region = 73 }

</bundles_post_ra>
